<compile_context>
chip_gen: v6e
topology: v6e:2x2x1
jax: 0.10.0
libtpu: 0.0.40
codegen_flags: <defaults>
</compile_context>

<pallas_src>
import jax
import jax.numpy as jnp
from jax.experimental import pallas as pl
from jax.experimental.pallas import tpu as pltpu

IN_FEATS = 5     # true input features
IN_PAD = 8       # padded input features (sublane-friendly)
HIDDEN = 100     # true hidden width
H_PAD = 128      # padded hidden / output width (lane-dense)


def _round_up(n, m):
    return ((n + m - 1) // m) * m


def mlp_kernel(x_ref,
               w1_ref, b1_ref,
               w2_ref, b2_ref,
               w3_ref, b3_ref,
               w4_ref, b4_ref,
               w5_ref, b5_ref,
               o_ref):
    # bf16 operands into the MXU, f32 accumulation; bias/ReLU/sigmoid in f32.
    x = x_ref[...].astype(jnp.bfloat16)

    h = jnp.dot(x, w1_ref[...], preferred_element_type=jnp.float32)
    h = jnp.maximum(h + b1_ref[...], 0.0)

    h = jnp.dot(h.astype(jnp.bfloat16), w2_ref[...],
                preferred_element_type=jnp.float32)
    h = jnp.maximum(h + b2_ref[...], 0.0)

    h = jnp.dot(h.astype(jnp.bfloat16), w3_ref[...],
                preferred_element_type=jnp.float32)
    h = jnp.maximum(h + b3_ref[...], 0.0)

    h = jnp.dot(h.astype(jnp.bfloat16), w4_ref[...],
                preferred_element_type=jnp.float32)
    h = jnp.maximum(h + b4_ref[...], 0.0)

    logits = jnp.dot(h.astype(jnp.bfloat16), w5_ref[...],
                     preferred_element_type=jnp.float32) + b5_ref[...]
    # Lane-dense (TB, 128) store; only column 0 is meaningful.
    o_ref[...] = jax.nn.sigmoid(logits).astype(o_ref.dtype)


def init_params(key):
    """Raw f32 params mirroring nn.Linear shapes, stored as (in, out)."""
    dims = [(IN_FEATS, HIDDEN), (HIDDEN, HIDDEN), (HIDDEN, HIDDEN),
            (HIDDEN, HIDDEN), (HIDDEN, 1)]
    params = []
    for (fan_in, fan_out) in dims:
        key, kw, kb = jax.random.split(key, 3)
        bound = 1.0 / jnp.sqrt(fan_in)
        w = jax.random.uniform(kw, (fan_in, fan_out), jnp.float32, -bound, bound)
        b = jax.random.uniform(kb, (1, fan_out), jnp.float32, -bound, bound)
        params += [w, b]
    return tuple(params)


def prepare_params(raw_params):
    """Pad to MXU-friendly shapes (once, at init) and cast weights to bf16."""
    w1, b1, w2, b2, w3, b3, w4, b4, w5, b5 = raw_params

    def pad_w(w, rows, cols):
        w = jnp.pad(w, ((0, rows - w.shape[0]), (0, cols - w.shape[1])))
        return w.astype(jnp.bfloat16)

    def pad_b(b, cols):
        return jnp.pad(b, ((0, 0), (0, cols - b.shape[1]))).astype(jnp.float32)

    return (pad_w(w1, IN_PAD, H_PAD), pad_b(b1, H_PAD),
            pad_w(w2, H_PAD, H_PAD), pad_b(b2, H_PAD),
            pad_w(w3, H_PAD, H_PAD), pad_b(b3, H_PAD),
            pad_w(w4, H_PAD, H_PAD), pad_b(b4, H_PAD),
            pad_w(w5, H_PAD, H_PAD), pad_b(b5, H_PAD))


def net_forward(x, padded_params, *, batch_tile=512):
    """x: (B, 5) float32 -> (B, 1) float32 sigmoid output."""
    B = x.shape[0]
    tb = min(batch_tile, _round_up(B, 8))   # batch tile (multiple of 8)
    B_pad = _round_up(B, tb)
    num_tiles = pl.cdiv(B_pad, tb)

    x_pad = jnp.pad(x.astype(jnp.float32),
                    ((0, B_pad - B), (0, IN_PAD - x.shape[1])))

    # Weights/biases: full block, constant index_map -> VMEM-resident
    # across all batch-grid steps.
    def resident_spec(a):
        return pl.BlockSpec(a.shape, lambda i: (0, 0))

    flops = 2 * B_pad * (IN_PAD * H_PAD + 4 * H_PAD * H_PAD)
    bytes_accessed = (x_pad.size * x_pad.dtype.itemsize
                      + sum(int(p.size) * p.dtype.itemsize for p in padded_params)
                      + B_pad * H_PAD * 4)
    cost = pl.CostEstimate(flops=flops,
                           transcendentals=B_pad * H_PAD,
                           bytes_accessed=bytes_accessed)

    out_pad = pl.pallas_call(
        mlp_kernel,
        out_shape=jax.ShapeDtypeStruct((B_pad, H_PAD), jnp.float32),
        grid=(num_tiles,),
        in_specs=[pl.BlockSpec((tb, IN_PAD), lambda i: (i, 0))]
                 + [resident_spec(p) for p in padded_params],
        out_specs=pl.BlockSpec((tb, H_PAD), lambda i: (i, 0)),
        compiler_params=pltpu.CompilerParams(
            dimension_semantics=("parallel",),
            vmem_limit_bytes=32 * 1024 * 1024),
        cost_estimate=cost,
    )(x_pad, *padded_params)

    # Drop padded batch rows and padded output lanes (real output = column 0).
    return out_pad[:B, :1]


if __name__ == "__main__":
    key = jax.random.PRNGKey(0)
    kx, kp = jax.random.split(key)

    B = 8  # small batch
    x = jax.random.normal(kx, (B, IN_FEATS), jnp.float32)

    raw_params = init_params(kp)
    padded_params = prepare_params(raw_params)

    out = net_forward(x, padded_params)
    out = jax.block_until_ready(out)

    # Sanity check against plain-JAX f32 reference (bf16 MXU operands in the
    # kernel => use a relaxed tolerance).
    def ref(x, p):
        w1, b1, w2, b2, w3, b3, w4, b4, w5, b5 = p
        h = jnp.maximum(x @ w1 + b1, 0.0)
        h = jnp.maximum(h @ w2 + b2, 0.0)
        h = jnp.maximum(h @ w3 + b3, 0.0)
        h = jnp.maximum(h @ w4 + b4, 0.0)
        return jax.nn.sigmoid(h @ w5 + b5)

    expected = ref(x, raw_params)
    assert out.shape == (B, 1)
    assert jnp.allclose(out, expected, atol=2e-2, rtol=2e-2)

    print("KERNEL_OK")
</pallas_src>

<mosaic_0001>
module attributes {stable_mosaic.version = 11 : i64} {
  func.func @mlp_kernel(%arg0: i32, %arg1: memref<8x8xf32, #tpu.memory_space<vmem>>, %arg2: memref<8x128xbf16, #tpu.memory_space<vmem>>, %arg3: memref<1x128xf32, #tpu.memory_space<vmem>>, %arg4: memref<128x128xbf16, #tpu.memory_space<vmem>>, %arg5: memref<1x128xf32, #tpu.memory_space<vmem>>, %arg6: memref<128x128xbf16, #tpu.memory_space<vmem>>, %arg7: memref<1x128xf32, #tpu.memory_space<vmem>>, %arg8: memref<128x128xbf16, #tpu.memory_space<vmem>>, %arg9: memref<1x128xf32, #tpu.memory_space<vmem>>, %arg10: memref<128x128xbf16, #tpu.memory_space<vmem>>, %arg11: memref<1x128xf32, #tpu.memory_space<vmem>>, %arg12: memref<8x128xf32, #tpu.memory_space<vmem>>) attributes {dimension_semantics = [#tpu.dimension_semantics<parallel>], iteration_bounds = array<i64: 1>, scalar_prefetch = 0 : i64, scratch_operands = 0 : i64, tpu.core_type = #tpu.core_type<tc>, window_params = [{transform_indices = @transform_0, window_bounds = array<i64: 8, 8>}, {pipeline_mode = #tpu.pipeline_mode<synchronous>, transform_indices = @transform_1, window_bounds = array<i64: 8, 128>}, {pipeline_mode = #tpu.pipeline_mode<synchronous>, transform_indices = @transform_2, window_bounds = array<i64: 1, 128>}, {pipeline_mode = #tpu.pipeline_mode<synchronous>, transform_indices = @transform_3, window_bounds = array<i64: 128, 128>}, {pipeline_mode = #tpu.pipeline_mode<synchronous>, transform_indices = @transform_4, window_bounds = array<i64: 1, 128>}, {pipeline_mode = #tpu.pipeline_mode<synchronous>, transform_indices = @transform_5, window_bounds = array<i64: 128, 128>}, {pipeline_mode = #tpu.pipeline_mode<synchronous>, transform_indices = @transform_6, window_bounds = array<i64: 1, 128>}, {pipeline_mode = #tpu.pipeline_mode<synchronous>, transform_indices = @transform_7, window_bounds = array<i64: 128, 128>}, {pipeline_mode = #tpu.pipeline_mode<synchronous>, transform_indices = @transform_8, window_bounds = array<i64: 1, 128>}, {pipeline_mode = #tpu.pipeline_mode<synchronous>, transform_indices = @transform_9, window_bounds = array<i64: 128, 128>}, {pipeline_mode = #tpu.pipeline_mode<synchronous>, transform_indices = @transform_10, window_bounds = array<i64: 1, 128>}, {transform_indices = @transform_11, window_bounds = array<i64: 8, 128>}]} {
    %c0 = arith.constant 0 : index
    %c0_0 = arith.constant 0 : index
    %0 = vector.load %arg1[%c0, %c0_0] : memref<8x8xf32, #tpu.memory_space<vmem>>, vector<8x8xf32>
    %1 = arith.truncf %0 : vector<8x8xf32> to vector<8x8xbf16>
    %c0_1 = arith.constant 0 : index
    %c0_2 = arith.constant 0 : index
    %2 = vector.load %arg2[%c0_1, %c0_2] : memref<8x128xbf16, #tpu.memory_space<vmem>>, vector<8x128xbf16>
    %cst = arith.constant dense<0.000000e+00> : vector<8x128xf32>
    %3 = tpu.matmul %1, %2, %cst {dimension_numbers = #tpu.dot_dimension_numbers<[1], [0], [0], [1], [0, 0, 1, 1], [], []>} : vector<8x8xbf16>, vector<8x128xbf16>, vector<8x128xf32> -> vector<8x128xf32>
    %c0_3 = arith.constant 0 : index
    %c0_4 = arith.constant 0 : index
    %4 = vector.load %arg3[%c0_3, %c0_4] : memref<1x128xf32, #tpu.memory_space<vmem>>, vector<1x128xf32>
    %5 = vector.broadcast %4 : vector<1x128xf32> to vector<8x128xf32>
    %6 = arith.addf %3, %5 : vector<8x128xf32>
    %cst_5 = arith.constant 0.000000e+00 : f32
    %7 = vector.broadcast %cst_5 : f32 to vector<8x128xf32>
    %8 = arith.maximumf %6, %7 : vector<8x128xf32>
    %9 = arith.truncf %8 : vector<8x128xf32> to vector<8x128xbf16>
    %c0_6 = arith.constant 0 : index
    %c0_7 = arith.constant 0 : index
    %10 = vector.load %arg4[%c0_6, %c0_7] : memref<128x128xbf16, #tpu.memory_space<vmem>>, vector<128x128xbf16>
    %cst_8 = arith.constant dense<0.000000e+00> : vector<8x128xf32>
    %11 = tpu.matmul %9, %10, %cst_8 {dimension_numbers = #tpu.dot_dimension_numbers<[1], [0], [0], [1], [0, 0, 1, 1], [], []>} : vector<8x128xbf16>, vector<128x128xbf16>, vector<8x128xf32> -> vector<8x128xf32>
    %c0_9 = arith.constant 0 : index
    %c0_10 = arith.constant 0 : index
    %12 = vector.load %arg5[%c0_9, %c0_10] : memref<1x128xf32, #tpu.memory_space<vmem>>, vector<1x128xf32>
    %13 = vector.broadcast %12 : vector<1x128xf32> to vector<8x128xf32>
    %14 = arith.addf %11, %13 : vector<8x128xf32>
    %cst_11 = arith.constant 0.000000e+00 : f32
    %15 = vector.broadcast %cst_11 : f32 to vector<8x128xf32>
    %16 = arith.maximumf %14, %15 : vector<8x128xf32>
    %17 = arith.truncf %16 : vector<8x128xf32> to vector<8x128xbf16>
    %c0_12 = arith.constant 0 : index
    %c0_13 = arith.constant 0 : index
    %18 = vector.load %arg6[%c0_12, %c0_13] : memref<128x128xbf16, #tpu.memory_space<vmem>>, vector<128x128xbf16>
    %cst_14 = arith.constant dense<0.000000e+00> : vector<8x128xf32>
    %19 = tpu.matmul %17, %18, %cst_14 {dimension_numbers = #tpu.dot_dimension_numbers<[1], [0], [0], [1], [0, 0, 1, 1], [], []>} : vector<8x128xbf16>, vector<128x128xbf16>, vector<8x128xf32> -> vector<8x128xf32>
    %c0_15 = arith.constant 0 : index
    %c0_16 = arith.constant 0 : index
    %20 = vector.load %arg7[%c0_15, %c0_16] : memref<1x128xf32, #tpu.memory_space<vmem>>, vector<1x128xf32>
    %21 = vector.broadcast %20 : vector<1x128xf32> to vector<8x128xf32>
    %22 = arith.addf %19, %21 : vector<8x128xf32>
    %cst_17 = arith.constant 0.000000e+00 : f32
    %23 = vector.broadcast %cst_17 : f32 to vector<8x128xf32>
    %24 = arith.maximumf %22, %23 : vector<8x128xf32>
    %25 = arith.truncf %24 : vector<8x128xf32> to vector<8x128xbf16>
    %c0_18 = arith.constant 0 : index
    %c0_19 = arith.constant 0 : index
    %26 = vector.load %arg8[%c0_18, %c0_19] : memref<128x128xbf16, #tpu.memory_space<vmem>>, vector<128x128xbf16>
    %cst_20 = arith.constant dense<0.000000e+00> : vector<8x128xf32>
    %27 = tpu.matmul %25, %26, %cst_20 {dimension_numbers = #tpu.dot_dimension_numbers<[1], [0], [0], [1], [0, 0, 1, 1], [], []>} : vector<8x128xbf16>, vector<128x128xbf16>, vector<8x128xf32> -> vector<8x128xf32>
    %c0_21 = arith.constant 0 : index
    %c0_22 = arith.constant 0 : index
    %28 = vector.load %arg9[%c0_21, %c0_22] : memref<1x128xf32, #tpu.memory_space<vmem>>, vector<1x128xf32>
    %29 = vector.broadcast %28 : vector<1x128xf32> to vector<8x128xf32>
    %30 = arith.addf %27, %29 : vector<8x128xf32>
    %cst_23 = arith.constant 0.000000e+00 : f32
    %31 = vector.broadcast %cst_23 : f32 to vector<8x128xf32>
    %32 = arith.maximumf %30, %31 : vector<8x128xf32>
    %33 = arith.truncf %32 : vector<8x128xf32> to vector<8x128xbf16>
    %c0_24 = arith.constant 0 : index
    %c0_25 = arith.constant 0 : index
    %34 = vector.load %arg10[%c0_24, %c0_25] : memref<128x128xbf16, #tpu.memory_space<vmem>>, vector<128x128xbf16>
    %cst_26 = arith.constant dense<0.000000e+00> : vector<8x128xf32>
    %35 = tpu.matmul %33, %34, %cst_26 {dimension_numbers = #tpu.dot_dimension_numbers<[1], [0], [0], [1], [0, 0, 1, 1], [], []>} : vector<8x128xbf16>, vector<128x128xbf16>, vector<8x128xf32> -> vector<8x128xf32>
    %c0_27 = arith.constant 0 : index
    %c0_28 = arith.constant 0 : index
    %36 = vector.load %arg11[%c0_27, %c0_28] : memref<1x128xf32, #tpu.memory_space<vmem>>, vector<1x128xf32>
    %37 = vector.broadcast %36 : vector<1x128xf32> to vector<8x128xf32>
    %38 = arith.addf %35, %37 : vector<8x128xf32>
    %39 = arith.negf %38 : vector<8x128xf32>
    %40 = math.exp %39 : vector<8x128xf32>
    %cst_29 = arith.constant 1.000000e+00 : f32
    %41 = vector.broadcast %cst_29 : f32 to vector<8x128xf32>
    %42 = arith.addf %41, %40 : vector<8x128xf32>
    %43 = arith.divf %41, %42 : vector<8x128xf32>
    %c0_30 = arith.constant 0 : index
    %c0_31 = arith.constant 0 : index
    %44 = vector.load %arg12[%c0_30, %c0_31] : memref<8x128xf32, #tpu.memory_space<vmem>>, vector<8x128xf32>
    tpu.vector_store %arg12[%c0_30, %c0_31], %43 {strides = array<i32>} : memref<8x128xf32, #tpu.memory_space<vmem>>, vector<8x128xf32>,
    return
  }
  func.func @transform_0(%arg0: i32) -> (i32, i32) {
    %c0_i32 = arith.constant 0 : i32
    %c0_i32_0 = arith.constant 0 : i32
    return %arg0, %c0_i32 : i32, i32
  }
  func.func @transform_1(%arg0: i32) -> (i32, i32) {
    %c0_i32 = arith.constant 0 : i32
    %c0_i32_0 = arith.constant 0 : i32
    %c0_i32_1 = arith.constant 0 : i32
    return %c0_i32, %c0_i32_0 : i32, i32
  }
  func.func @transform_2(%arg0: i32) -> (i32, i32) {
    %c0_i32 = arith.constant 0 : i32
    %c0_i32_0 = arith.constant 0 : i32
    %c0_i32_1 = arith.constant 0 : i32
    return %c0_i32, %c0_i32_0 : i32, i32
  }
  func.func @transform_3(%arg0: i32) -> (i32, i32) {
    %c0_i32 = arith.constant 0 : i32
    %c0_i32_0 = arith.constant 0 : i32
    %c0_i32_1 = arith.constant 0 : i32
    return %c0_i32, %c0_i32_0 : i32, i32
  }
  func.func @transform_4(%arg0: i32) -> (i32, i32) {
    %c0_i32 = arith.constant 0 : i32
    %c0_i32_0 = arith.constant 0 : i32
    %c0_i32_1 = arith.constant 0 : i32
    return %c0_i32, %c0_i32_0 : i32, i32
  }
  func.func @transform_5(%arg0: i32) -> (i32, i32) {
    %c0_i32 = arith.constant 0 : i32
    %c0_i32_0 = arith.constant 0 : i32
    %c0_i32_1 = arith.constant 0 : i32
    return %c0_i32, %c0_i32_0 : i32, i32
  }
  func.func @transform_6(%arg0: i32) -> (i32, i32) {
    %c0_i32 = arith.constant 0 : i32
    %c0_i32_0 = arith.constant 0 : i32
    %c0_i32_1 = arith.constant 0 : i32
    return %c0_i32, %c0_i32_0 : i32, i32
  }
  func.func @transform_7(%arg0: i32) -> (i32, i32) {
    %c0_i32 = arith.constant 0 : i32
    %c0_i32_0 = arith.constant 0 : i32
    %c0_i32_1 = arith.constant 0 : i32
    return %c0_i32, %c0_i32_0 : i32, i32
  }
  func.func @transform_8(%arg0: i32) -> (i32, i32) {
    %c0_i32 = arith.constant 0 : i32
    %c0_i32_0 = arith.constant 0 : i32
    %c0_i32_1 = arith.constant 0 : i32
    return %c0_i32, %c0_i32_0 : i32, i32
  }
  func.func @transform_9(%arg0: i32) -> (i32, i32) {
    %c0_i32 = arith.constant 0 : i32
    %c0_i32_0 = arith.constant 0 : i32
    %c0_i32_1 = arith.constant 0 : i32
    return %c0_i32, %c0_i32_0 : i32, i32
  }
  func.func @transform_10(%arg0: i32) -> (i32, i32) {
    %c0_i32 = arith.constant 0 : i32
    %c0_i32_0 = arith.constant 0 : i32
    %c0_i32_1 = arith.constant 0 : i32
    return %c0_i32, %c0_i32_0 : i32, i32
  }
  func.func @transform_11(%arg0: i32) -> (i32, i32) {
    %c0_i32 = arith.constant 0 : i32
    %c0_i32_0 = arith.constant 0 : i32
    return %arg0, %c0_i32 : i32, i32
  }
}

</mosaic_0001>

<bundles_post_ra>
// kernel: tpu_custom_call.1
= control target key start
LH: loop header
LB: loop body
LE: loop exit
PB: predicated region body
PF: predicated region fallthrough
CT: control target
= control target key end

     0   :  { %16 = vsyncpa [#allocation3], 0  ;;  %s1175_s0 = inlined_call_operand.hbm [shape: f32[8,8], index: 0, kind: input, shape index: {}]   ;;  %s1176_s1 = inlined_call_operand.hbm [shape: bf16[8,128], index: 1, kind: input, shape index: {}]   ;;  %s1177_s2 = inlined_call_operand.vmem [shape: f32[1,128], index: 2, kind: input, shape index: {}]   ;;  %s1178_s3 = inlined_call_operand.hbm [shape: bf16[128,128], index: 3, kind: input, shape index: {}]   ;;  %s1179_s4 = inlined_call_operand.vmem [shape: f32[1,128], index: 4, kind: input, shape index: {}]   ;;  %s1180_s5 = inlined_call_operand.hbm [shape: bf16[128,128], index: 5, kind: input, shape index: {}]   ;;  %s1181_s6 = inlined_call_operand.vmem [shape: f32[1,128], index: 6, kind: input, shape index: {}]   ;;  %s1182_s7 = inlined_call_operand.hbm [shape: bf16[128,128], index: 7, kind: input, shape index: {}]   ;;  %s1183_s8 = inlined_call_operand.vmem [shape: f32[1,128], index: 8, kind: input, shape index: {}]   ;;  %s1184_s9 = inlined_call_operand.hbm [shape: bf16[128,128], index: 9, kind: input, shape index: {}]   ;;  %s1185_s10 = inlined_call_operand.vmem [shape: f32[1,128], index: 10, kind: input, shape index: {}]   ;;  %s1186_s11 = inlined_call_operand.hbm [shape: f32[8,128], index: 11, kind: output, shape index: {}]  }
   0x1   :  { %17 = vsyncpa [#allocation6], 0 }
   0x2   :  { %18 = vsyncpa [#allocation9], 0 }
   0x3   :  { %19 = vsyncpa [#allocation12], 0 }
   0x4   :  { %20 = vsyncpa [#allocation4], 0  ;;  %s1013_s17 = smov [#allocation5]  }
   0x5   :  { %s37_s18 = sshll.u32 %s1013_s17, 4  ;;  %s38_s18 = int_to_ptr.vmem [resolvable:$true] %s37_s18 }
   0x6   :  { %s871_s19 = scalar_lea.vmem %s38_s18, 64  ;;  %p876_p1 = scmp.lt.s32.totalorder %s38_s18, %s38_s18 }
   0x7   :  { %p872_p0 = scmp.ne.s32.totalorder %s38_s18, %s871_s19  ;;  %p877_p2 = scmp.lt.s32.totalorder %s871_s19, %s871_s19 }
   0x9   :  { %p878_p3 = por %p877_p2, %p876_p1 }
   0xb   :  { %p879_p4 = pnand %p878_p3, %p872_p0 }
   0xd   :  { %882 = shalt.err (!%p879_p4)
}
   0xe   :  { %40 = dma.hbm_to_vmem [thread:$0]  %s1176_s1, 64, %s38_s18, [#allocation6]  }
   0xf   :  { %s1014_s22 = smov [#allocation8]   ;;  %s1015_s24 = smov [#allocation2]  }
  0x10   :  { %s62_s23 = sshll.u32 %s1014_s22, 4  ;;  %s27_s25 = sshll.u32 %s1015_s24, 4  ;;  %s63_s23 = int_to_ptr.vmem [resolvable:$true] %s62_s23  ;;  %s28_s25 = int_to_ptr.vmem [resolvable:$true] %s27_s25 }
  0x11   :  { %s891_s26 = scalar_lea.vmem %s63_s23, 1024  ;;  %p896_p6 = scmp.lt.s32.totalorder %s63_s23, %s63_s23 }
  0x12   :  { %p892_p5 = scmp.ne.s32.totalorder %s63_s23, %s891_s26  ;;  %p897_p7 = scmp.lt.s32.totalorder %s891_s26, %s891_s26 }
  0x14   :  { %p898_p8 = por %p897_p7, %p896_p6 }
  0x16   :  { %p899_p9 = pnand %p898_p8, %p892_p5 }
  0x18   :  { %902 = shalt.err (!%p899_p9)
}
  0x19   :  { %s1016_s27 = smov 64   ;;  %s1017_s28 = smov 4  }
  0x1a   :  { %68 = dma.hbm_to_vmem [thread:$0]  %s1180_s5, 1024, %s63_s23, [#allocation9], %s1016_s27, %s1016_s27, %s1017_s28  }
  0x1b   :  { %s911_s1 = scalar_lea.vmem %s28_s25, 128  ;;  %p916_p11 = scmp.lt.s32.totalorder %s28_s25, %s28_s25 }
  0x1c   :  { %p912_p10 = scmp.ne.s32.totalorder %s28_s25, %s911_s1  ;;  %p917_p12 = scmp.lt.s32.totalorder %s911_s1, %s911_s1 }
  0x1e   :  { %p918_p13 = por %p917_p12, %p916_p11 }
  0x20   :  { %p919_p0 = pnand %p918_p13, %p912_p10 }
  0x22   :  { %922 = shalt.err (!%p919_p0)
}
  0x23   :  { %30 = dma.hbm_to_vmem [thread:$0]  %s1175_s0, 128, %s28_s25, [#allocation3]  }
  0x24   :  { %s1018_s14 = smov [#allocation7]   ;;  %s1019_s16 = smov [#allocation10]  }
  0x25   :  { %s48_s15 = sshll.u32 %s1018_s14, 4  ;;  %s76_s17 = sshll.u32 %s1019_s16, 4  ;;  %s49_s15 = int_to_ptr.vmem [resolvable:$true] %s48_s15  ;;  %s77_s17 = int_to_ptr.vmem [resolvable:$true] %s76_s17 }
  0x26   :  { %s931_s18 = scalar_lea.vmem %s49_s15, 1024  ;;  %p936_p2 = scmp.lt.s32.totalorder %s49_s15, %s49_s15 }
  0x27   :  { %p932_p1 = scmp.ne.s32.totalorder %s49_s15, %s931_s18  ;;  %p937_p3 = scmp.lt.s32.totalorder %s931_s18, %s931_s18 }
  0x29   :  { %p938_p4 = por %p937_p3, %p936_p2 }
  0x2b   :  { %p939_p5 = pnand %p938_p4, %p932_p1 }
  0x2d   :  { %942 = shalt.err (!%p939_p5)
}
  0x2e   :  { %54 = dma.hbm_to_vmem [thread:$0]  %s1178_s3, 1024, %s49_s15, [#allocation6], %s1016_s27, %s1016_s27, %s1017_s28  }
  0x2f   :  { %s951_s0 = scalar_lea.vmem %s77_s17, 1024  ;;  %p956_p7 = scmp.lt.s32.totalorder %s77_s17, %s77_s17 }
  0x30   :  { %p952_p6 = scmp.ne.s32.totalorder %s77_s17, %s951_s0  ;;  %p957_p8 = scmp.lt.s32.totalorder %s951_s0, %s951_s0 }
  0x32   :  { %p958_p9 = por %p957_p8, %p956_p7 }
  0x34   :  { %p959_p10 = pnand %p958_p9, %p952_p6 }
  0x36   :  { %962 = shalt.err (!%p959_p10)
}
  0x37   :  { %82 = dma.hbm_to_vmem [thread:$0]  %s1182_s7, 1024, %s77_s17, [#allocation9], %s1016_s27, %s1016_s27, %s1017_s28  }
  0x38   :  { %s1020_s22 = smov [#allocation11]  }
  0x39   :  { %s90_s23 = sshll.u32 %s1020_s22, 4  ;;  %s91_s23 = int_to_ptr.vmem [resolvable:$true] %s90_s23 }
  0x3a   :  { %s971_s24 = scalar_lea.vmem %s91_s23, 1024  ;;  %p976_p12 = scmp.lt.s32.totalorder %s91_s23, %s91_s23 }
  0x3b   :  { %p972_p11 = scmp.ne.s32.totalorder %s91_s23, %s971_s24  ;;  %p977_p13 = scmp.lt.s32.totalorder %s971_s24, %s971_s24 }
  0x3d   :  { %p978_p0 = por %p977_p13, %p976_p12 }
  0x3f   :  { %p979_p1 = pnand %p978_p0, %p972_p11 }
  0x41   :  { %982 = shalt.err (!%p979_p1)
}
  0x42   :  { %96 = dma.hbm_to_vmem [thread:$0]  %s1184_s9, 1024, %s91_s23, [#allocation12], %s1016_s27, %s1016_s27, %s1017_s28  }
  0x43   :  { %1003 = dma.done.wait [#allocation3], 128  }
  0x44   :  { %1004 = vsyncadd [#allocation3], 4294967168 }
  0x45   :  { %1005 = dma.done.wait [#allocation6], 1088  }
  0x46   :  { %1006 = vsyncadd [#allocation6], 4294966208 }
  0x47   :  { %1007 = dma.done.wait [#allocation9], 2048  }
  0x48   :  { %1008 = vsyncadd [#allocation9], 4294965248 }
  0x49   :  { %1009 = dma.done.wait [#allocation12], 1024  }
  0x4a   :  { %1010 = vsyncadd [#allocation12], 4294966272  ;;  %v1021_v0 = vmov 0.0   ;;  %vm1022_vm0 = vmmov 0   ;;  %vm132_vm1 = vcmask 1043456   ;;  %v118_v2 = vld [vmem:[#allocation2] sm:$0xff] }
  0x4b   :  { %730 = vmatprep.subr.bf16.mxu0 %v1021_v0  ;;  %732 = vmatprep.mubr.msk.bf16.mxu0 %vm1022_vm0, %v1021_v0  ;;  %v120_v1 = vld [vmem:[#allocation5] sm:$0xf]  ;;  %v119_v4 = vpack.c.bf16 %v118_v2, %v118_v2  ;;  %vm128_vm2 = vcmask 64512   ;;  %v828_v6 = vld [vmem:[#allocation7 + $0x30] sm:$0xff]   ;;  %v829_v7 = vld [vmem:[#allocation7 + $0x28] sm:$0xff]  }
  0x4c   :  { %736 = vmatprep.subr.bf16.mxu1 %v1021_v0  ;;  %752 = vmatprep.mubr.msk.bf16.mxu1 %vm1022_vm0, %v1021_v0  ;;  %v134_v3 = vsel %vm132_vm1, %v120_v1, 0  ;;  %v827_v5 = vld [vmem:[#allocation7 + $0x38] sm:$0xff]   ;;  %v830_v8 = vld [vmem:[#allocation7 + $0x20] sm:$0xff]   ;;  %v832_v10 = vld [vmem:[#allocation7 + $0x10] sm:$0xff]  }
  0x4d   :  { %731 = vmatpush3.bf16.msra.mxu0 %v134_v3  ;;  %737 = vmatpush3.bf16.msra.mxu1 %v827_v5  ;;  %v831_v9 = vld [vmem:[#allocation7 + $0x18] sm:$0xff]   ;;  %v833_v11 = vld [vmem:[#allocation7 + $0x8] sm:$0xff]   ;;  %v834_v12 = vld [vmem:[#allocation7] sm:$0xff]  }
  0x4e   :  { %756 = vmatprep.subr.bf16.mxu0 %v1021_v0  ;;  %738 = vmatprep.subr.bf16.mxu1 %v1021_v0  ;;  %v835_v13 = vld [vmem:[#allocation8 + $0x38] sm:$0xff]   ;;  %v836_v14 = vld [vmem:[#allocation8 + $0x30] sm:$0xff]   ;;  %v837_v15 = vld [vmem:[#allocation8 + $0x28] sm:$0xff]  }
  0x4f   :  { %v838_v16 = vld [vmem:[#allocation8 + $0x20] sm:$0xff]   ;;  %v839_v17 = vld [vmem:[#allocation8 + $0x18] sm:$0xff]   ;;  %v840_v18 = vld [vmem:[#allocation8 + $0x10] sm:$0xff]  }
  0x50   :  { %733 = vmatmul.mubr.msk.bf16.vlgmr.msra.gmra.mxu0 %vm128_vm2, %v119_v4  ;;  %v653_v19 = vld [vmem:[%s1177_s2] ss:$0 sm:$0xff]  ;;  %v841_v27 = vld [vmem:[#allocation8 + $0x8] sm:$0xff]   ;;  %v842_v28 = vld [vmem:[#allocation8] sm:$0xff]  }
  0x51   :  { %772 = vmatprep.mubr.msk.bf16.mxu0 %vm1022_vm0, %v1021_v0  ;;  %739 = vmatpush3.bf16.msra.mxu1 %v828_v6  ;;  %v843_v29 = vld [vmem:[#allocation10 + $0x38] sm:$0xff]   ;;  %v844_v30 = vld [vmem:[#allocation10 + $0x30] sm:$0xff]   ;;  %v845_v31 = vld [vmem:[#allocation10 + $0x28] sm:$0xff]  }
  0x52   :  { %740 = vmatprep.subr.bf16.mxu1 %v1021_v0  ;;  %757 = vmatpush3.bf16.msra.mxu0 %v835_v13  ;;  %v846_v32 = vld [vmem:[#allocation10 + $0x20] sm:$0xff]   ;;  %v847_v33 = vld [vmem:[#allocation10 + $0x18] sm:$0xff]   ;;  %v848_v34 = vld [vmem:[#allocation10 + $0x10] sm:$0xff]  }
  0x53   :  { %758 = vmatprep.subr.bf16.mxu0 %v1021_v0  ;;  %v655_v35 = vld [vmem:[%s1179_s4] ss:$0 sm:$0xff]  ;;  %v849_v43 = vld [vmem:[#allocation10 + $0x8] sm:$0xff]   ;;  %v850_v44 = vld [vmem:[#allocation10] sm:$0xff]  }
  0x54   :  { %v851_v45 = vld [vmem:[#allocation11 + $0x38] sm:$0xff]   ;;  %v852_v46 = vld [vmem:[#allocation11 + $0x30] sm:$0xff]   ;;  %v853_v47 = vld [vmem:[#allocation11 + $0x28] sm:$0xff]  }
  0x55   :  { %741 = vmatpush3.bf16.msra.mxu1 %v829_v7  ;;  %v854_v48 = vld [vmem:[#allocation11 + $0x20] sm:$0xff]   ;;  %v855_v49 = vld [vmem:[#allocation11 + $0x18] sm:$0xff]   ;;  %v856_v50 = vld [vmem:[#allocation11 + $0x10] sm:$0xff]  }
  0x56   :  { %742 = vmatprep.subr.bf16.mxu1 %v1021_v0  ;;  %759 = vmatpush3.bf16.msra.mxu0 %v836_v14  ;;  %v664_v51 = vld [vmem:[%s1181_s6] ss:$0 sm:$0xff]  ;;  %v857_v59 = vld [vmem:[#allocation11 + $0x8] sm:$0xff]   ;;  %v858_v60 = vld [vmem:[#allocation11] sm:$0xff]  }
  0x57   :  { %760 = vmatprep.subr.bf16.mxu0 %v1021_v0  ;;  %v673_v61 = vld [vmem:[%s1183_s8] ss:$0 sm:$0xff]  ;;  %s1023_s8 = smov [#allocation13]  }
  0x58   :  { %v682_v6 = vld [vmem:[%s1185_s10] ss:$0 sm:$0xff]  ;;  %s641_s1 = sshll.u32 %s1023_s8, 4  ;;  %s642_s1 = int_to_ptr.vmem [resolvable:$true] %s641_s1 }
  0x59   :  { %743 = vmatpush3.bf16.msra.mxu1 %v830_v8  ;;  %s983_s12 = scalar_lea.vmem %s642_s1, 128  ;;  %p988_p3 = scmp.lt.s32.totalorder %s642_s1, %s642_s1 }
  0x5a   :  { %744 = vmatprep.subr.bf16.mxu1 %v1021_v0  ;;  %761 = vmatpush3.bf16.msra.mxu0 %v837_v15  ;;  %p984_p2 = scmp.ne.s32.totalorder %s642_s1, %s983_s12  ;;  %p989_p4 = scmp.lt.s32.totalorder %s983_s12, %s983_s12 }
  0x5b   :  { %762 = vmatprep.subr.bf16.mxu0 %v1021_v0 }
  0x5c   :  { %p990_p5 = por %p989_p4, %p988_p3 }
  0x5d   :  { %745 = vmatpush3.bf16.msra.mxu1 %v831_v9 }
  0x5e   :  { %746 = vmatprep.subr.bf16.mxu1 %v1021_v0  ;;  %763 = vmatpush3.bf16.msra.mxu0 %v838_v16  ;;  %p991_p6 = pnand %p990_p5, %p984_p2 }
  0x5f   :  { %764 = vmatprep.subr.bf16.mxu0 %v1021_v0 }
  0x61   :  { %747 = vmatpush3.bf16.msra.mxu1 %v832_v10 }
  0x62   :  { %748 = vmatprep.subr.bf16.mxu1 %v1021_v0  ;;  %765 = vmatpush3.bf16.msra.mxu0 %v839_v17 }
  0x63   :  { %766 = vmatprep.subr.bf16.mxu0 %v1021_v0 }
  0x65   :  { %749 = vmatpush3.bf16.msra.mxu1 %v833_v11 }
  0x66   :  { %750 = vmatprep.subr.bf16.mxu1 %v1021_v0  ;;  %767 = vmatpush3.bf16.msra.mxu0 %v840_v18 }
  0x67   :  { %768 = vmatprep.subr.bf16.mxu0 %v1021_v0 }
  0x69   :  { %751 = vmatpush3.bf16.msra.mxu1 %v834_v12 }
  0x6a   :  { %776 = vmatprep.subr.bf16.mxu1 %v1021_v0  ;;  %769 = vmatpush3.bf16.msra.mxu0 %v841_v27 }
  0x6b   :  { %770 = vmatprep.subr.bf16.mxu0 %v1021_v0 }
  0x6e   :  { %771 = vmatpush3.bf16.msra.mxu0 %v842_v28 }
  0x6f   :  { %796 = vmatprep.subr.bf16.mxu0 %v1021_v0 }
 0x110   :  { %v170_v20 = vpop.f32.mrf.mxu0 }
 0x111   :  { %v171_v21 = vadd.f32 %v653_v19, %v170_v20 }
 0x112   :  { %v734_v22 = vpop.f32.mrf.mxu0 }
 0x113   :  { %v176_v23 = vmax.f32 %v171_v21, 0.0 }
 0x114   :  { %v173_v24 = vpop.f32.mrf.mxu0 }
 0x115   :  { %v177_v25 = vpack.c.bf16 %v176_v23, %v176_v23 }
 0x116   :  { %v735_v26 = vpop.f32.mrf.mxu0 }
 0x117   :  { %753 = vmatmul.mubr.bf16.vlgmr.msra.gmra.mxu1 %v177_v25 }
 0x118   :  { %792 = vmatprep.mubr.msk.bf16.mxu1 %vm1022_vm0, %v1021_v0  ;;  %777 = vmatpush3.bf16.msra.mxu1 %v843_v29 }
 0x119   :  { %778 = vmatprep.subr.bf16.mxu1 %v1021_v0 }
 0x11c   :  { %779 = vmatpush3.bf16.msra.mxu1 %v844_v30 }
 0x11d   :  { %780 = vmatprep.subr.bf16.mxu1 %v1021_v0 }
 0x120   :  { %781 = vmatpush3.bf16.msra.mxu1 %v845_v31 }
 0x121   :  { %782 = vmatprep.subr.bf16.mxu1 %v1021_v0 }
 0x124   :  { %783 = vmatpush3.bf16.msra.mxu1 %v846_v32 }
 0x125   :  { %784 = vmatprep.subr.bf16.mxu1 %v1021_v0 }
 0x128   :  { %785 = vmatpush3.bf16.msra.mxu1 %v847_v33 }
 0x129   :  { %786 = vmatprep.subr.bf16.mxu1 %v1021_v0 }
 0x12c   :  { %787 = vmatpush3.bf16.msra.mxu1 %v848_v34 }
 0x12d   :  { %788 = vmatprep.subr.bf16.mxu1 %v1021_v0 }
 0x130   :  { %789 = vmatpush3.bf16.msra.mxu1 %v849_v43 }
 0x131   :  { %790 = vmatprep.subr.bf16.mxu1 %v1021_v0 }
 0x134   :  { %791 = vmatpush3.bf16.msra.mxu1 %v850_v44 }
 0x1d7   :  { %v283_v36 = vpop.f32.mrf.mxu1 }
 0x1d8   :  { %v284_v37 = vadd.f32 %v655_v35, %v283_v36 }
 0x1d9   :  { %v754_v38 = vpop.f32.mrf.mxu1 }
 0x1da   :  { %v289_v39 = vmax.f32 %v284_v37, 0.0 }
 0x1db   :  { %v286_v40 = vpop.f32.mrf.mxu1 }
 0x1dc   :  { %v290_v41 = vpack.c.bf16 %v289_v39, %v289_v39 }
 0x1dd   :  { %v755_v42 = vpop.f32.mrf.mxu1 }
 0x1de   :  { %773 = vmatmul.mubr.bf16.vlgmr.msra.gmra.mxu0 %v290_v41 }
 0x1df   :  { %812 = vmatprep.mubr.msk.bf16.mxu0 %vm1022_vm0, %v1021_v0  ;;  %797 = vmatpush3.bf16.msra.mxu0 %v851_v45 }
 0x1e0   :  { %798 = vmatprep.subr.bf16.mxu0 %v1021_v0 }
 0x1e3   :  { %799 = vmatpush3.bf16.msra.mxu0 %v852_v46 }
 0x1e4   :  { %800 = vmatprep.subr.bf16.mxu0 %v1021_v0 }
 0x1e7   :  { %801 = vmatpush3.bf16.msra.mxu0 %v853_v47 }
 0x1e8   :  { %802 = vmatprep.subr.bf16.mxu0 %v1021_v0 }
 0x1eb   :  { %803 = vmatpush3.bf16.msra.mxu0 %v854_v48 }
 0x1ec   :  { %804 = vmatprep.subr.bf16.mxu0 %v1021_v0 }
 0x1ef   :  { %805 = vmatpush3.bf16.msra.mxu0 %v855_v49 }
 0x1f0   :  { %806 = vmatprep.subr.bf16.mxu0 %v1021_v0 }
 0x1f3   :  { %807 = vmatpush3.bf16.msra.mxu0 %v856_v50 }
 0x1f4   :  { %808 = vmatprep.subr.bf16.mxu0 %v1021_v0 }
 0x1f7   :  { %809 = vmatpush3.bf16.msra.mxu0 %v857_v59 }
 0x1f8   :  { %810 = vmatprep.subr.bf16.mxu0 %v1021_v0 }
 0x1fb   :  { %811 = vmatpush3.bf16.msra.mxu0 %v858_v60 }
 0x29e   :  { %v396_v52 = vpop.f32.mrf.mxu0 }
 0x29f   :  { %v397_v53 = vadd.f32 %v664_v51, %v396_v52 }
 0x2a0   :  { %v774_v54 = vpop.f32.mrf.mxu0 }
 0x2a1   :  { %v402_v55 = vmax.f32 %v397_v53, 0.0 }
 0x2a2   :  { %v399_v56 = vpop.f32.mrf.mxu0 }
 0x2a3   :  { %v403_v57 = vpack.c.bf16 %v402_v55, %v402_v55 }
 0x2a4   :  { %v775_v58 = vpop.f32.mrf.mxu0 }
 0x2a5   :  { %793 = vmatmul.mubr.bf16.vlgmr.msra.gmra.mxu1 %v403_v57 }
 0x365   :  { %v509_v62 = vpop.f32.mrf.mxu1 }
 0x366   :  { %v510_v63 = vadd.f32 %v673_v61, %v509_v62 }
 0x367   :  { %v794_v1 = vpop.f32.mrf.mxu1 }
 0x368   :  { %v515_v2 = vmax.f32 %v510_v63, 0.0 }
 0x369   :  { %v512_v3 = vpop.f32.mrf.mxu1 }
 0x36a   :  { %v516_v4 = vpack.c.bf16 %v515_v2, %v515_v2 }
 0x36b   :  { %v795_v5 = vpop.f32.mrf.mxu1 }
 0x36c   :  { %813 = vmatmul.mubr.bf16.vlgmr.msra.gmra.mxu0 %v516_v4 }
 0x42c   :  { %v622_v7 = vpop.f32.mrf.mxu0 }
 0x42d   :  { %v623_v0 = vadd.f32 %v682_v6, %v622_v7 }
 0x42e   :  { %v814_v8 = vpop.f32.mrf.mxu0 }
 0x42f   :  { %v691_v9 = vmul.f32 -1.442695, %v623_v0 }
 0x430   :  { %v625_v10 = vpop.f32.mrf.mxu0 }
 0x431   :  { %859 = vpow2.f32 %v691_v9 }
 0x432   :  { %v815_v11 = vpop.f32.mrf.mxu0 }
 0x43e   :  { %v860_v12 = vpop.eup %859 }
 0x43f   :  { %v631_v13 = vadd.f32 1.0, %v860_v12 }
 0x441   :  { %861 = vrcp.f32 %v631_v13 }
 0x44e   :  { %v862_v14 = vpop.eup %861 }
 0x44f   :  { %634 = vst [vmem:[#allocation13] sm:$0xff] %v862_v14 }
 0x450   :  { %994 = shalt.err (!%p991_p6)
}
 0x451   :  { %644 = dma.vmem_to_hbm [thread:$0]  %s642_s1, 128, %s1186_s11, [#allocation4]  }
 0x452   :  { %1011 = dma.done.wait [#allocation4], 128  }
 0x453   :  { %1012 = vsyncadd [#allocation4], 4294967168 }
 0x454   :  { %648 = vsyncpa [#allocation3], 1 }
 0x455   :  { %649 = vsyncpa [#allocation6], 1 }
 0x456   :  { %650 = vsyncpa [#allocation9], 1 }
 0x457   :  { %651 = vsyncpa [#allocation12], 1 }
 0x458   :  { %652 = vsyncpa [#allocation4], 1 }

</bundles_post_ra>
